<compile_context>
chip_gen: v5e
topology: v5e:2x2
jax: 0.10.0
libtpu: 0.0.40
codegen_flags: <defaults>
</compile_context>

<pallas_src>
import functools

import jax
import jax.numpy as jnp
from jax.experimental import pallas as pl
from jax.experimental.pallas import tpu as pltpu

_NUM_LAYERS = 4  # Q_net: f1..f4


# ----------------------------------------------------------------------------
# Kernel: fused 4-layer MLP (Linear -> ReLU x3 -> Linear)
# ----------------------------------------------------------------------------
def _qnet_kernel(x_ref, w_ref, b_ref, o_ref):
    """x_ref: (B, D) f32 (zero-padded input); w_ref: (4, D, D) bf16 folded,
    pre-transposed (K, N), zero-padded; b_ref: (4, 1, D) bf16; o_ref: (B, D)."""
    h = x_ref[...]                                          # (B, D) f32
    for l in range(_NUM_LAYERS):
        w = w_ref[l]                                        # (D, D) bf16, static idx
        b = b_ref[l].astype(jnp.float32)                    # (1, D) f32
        h = jnp.dot(h.astype(jnp.bfloat16), w,
                    preferred_element_type=jnp.float32) + b  # MXU bf16, f32 acc
        if l < _NUM_LAYERS - 1:                              # no ReLU after f4
            h = jnp.maximum(h, 0.0)
    o_ref[...] = h.astype(o_ref.dtype)                       # lane-dense store


# ----------------------------------------------------------------------------
# Parameter construction (mirrors the PyTorch module's state)
# ----------------------------------------------------------------------------
def init_qnet_params(key, input_dim, output_dim, hidden=128):
    """Per-layer mu / sigma / epsilon in the torch (out_dim, in_dim) layout.

    epsilon buffers ~ U[0,1) (matches torch.rand in reset_epsilon); mu/sigma
    get a deterministic toy init (PyTorch leaves them uninitialized)."""
    dims = [input_dim, hidden, hidden, hidden, output_dim]
    params = []
    for l in range(_NUM_LAYERS):
        in_d, out_d = dims[l], dims[l + 1]
        key, k_wmu, k_bmu, k_weps, k_beps = jax.random.split(key, 5)
        bound = 1.0 / (in_d ** 0.5)
        params.append(dict(
            weight_mu=jax.random.uniform(k_wmu, (out_d, in_d),
                                         minval=-bound, maxval=bound,
                                         dtype=jnp.float32),
            weight_sigma=jnp.full((out_d, in_d), 0.017, jnp.float32),
            weight_epsilon=jax.random.uniform(k_weps, (out_d, in_d),
                                              dtype=jnp.float32),
            bias_mu=jax.random.uniform(k_bmu, (out_d,),
                                       minval=-bound, maxval=bound,
                                       dtype=jnp.float32),
            bias_sigma=jnp.full((out_d,), 0.017, jnp.float32),
            bias_epsilon=jax.random.uniform(k_beps, (out_d,),
                                            dtype=jnp.float32),
        ))
    return params


def fold_qnet_params(params, mode="Train", dtype=jnp.bfloat16):
    """Fold / transpose / pad / stack the Q_net parameters for the kernel.

    Call once per reset_noise() (and once for Eval).  Returns:
      w_stack: (4, D, D) `dtype`, each layer transposed to (in, out) and
               zero-padded to D = max dim rounded up to 128.
      b_stack: (4, 1, D) `dtype`, zero-padded.
    """
    all_dims = []
    for p in params:
        all_dims += list(p["weight_mu"].shape)
    D = max(128, -(-max(all_dims) // 128) * 128)

    ws, bs = [], []
    for p in params:
        if mode == "Train":
            w = p["weight_mu"] + p["weight_sigma"] * p["weight_epsilon"]
            b = p["bias_mu"] + p["bias_sigma"] * p["bias_epsilon"]
        else:
            w = p["weight_mu"]
            b = p["bias_mu"]
        w = w.T                                              # (in, out)
        w = jnp.pad(w, ((0, D - w.shape[0]), (0, D - w.shape[1])))
        b = jnp.pad(b, (0, D - b.shape[0])).reshape(1, D)
        ws.append(w.astype(dtype))
        bs.append(b.astype(dtype))
    return jnp.stack(ws), jnp.stack(bs)


# ----------------------------------------------------------------------------
# Forward pass
# ----------------------------------------------------------------------------
@functools.partial(jax.jit, static_argnames=("output_dim",))
def q_net_forward(x, w_stack, b_stack, output_dim):
    """Pallas TPU implementation of Q_net.forward (all 4 layers fused)."""
    assert x.ndim == 2, "x must be (batch, input_dim)"
    batch = x.shape[0]
    _, D, _ = w_stack.shape
    # Zero-pad the input feature dim to D (layout plumbing only).
    x_p = jnp.pad(x.astype(jnp.float32), ((0, 0), (0, D - x.shape[1])))

    vmem = pl.BlockSpec(memory_space=pltpu.MemorySpace.VMEM)
    out_p = pl.pallas_call(
        _qnet_kernel,
        out_shape=jax.ShapeDtypeStruct((batch, D), jnp.float32),
        in_specs=[vmem, vmem, vmem],
        out_specs=vmem,
    )(x_p, w_stack, b_stack)
    return out_p[:, :output_dim]


# ----------------------------------------------------------------------------
# References
# ----------------------------------------------------------------------------
def _q_net_ref_f32(x, params, mode):
    """Full-f32 reference, same math as the PyTorch module."""
    h = x
    for l, p in enumerate(params):
        if mode == "Train":
            w = p["weight_mu"] + p["weight_sigma"] * p["weight_epsilon"]
            b = p["bias_mu"] + p["bias_sigma"] * p["bias_epsilon"]
        else:
            w = p["weight_mu"]
            b = p["bias_mu"]
        h = h @ w.T + b
        if l < _NUM_LAYERS - 1:
            h = jnp.maximum(h, 0.0)
    return h


def _q_net_ref_folded(x, w_stack, b_stack, output_dim):
    """Reference that mirrors the kernel's bf16 quantization exactly."""
    D = w_stack.shape[1]
    h = jnp.pad(x.astype(jnp.float32), ((0, 0), (0, D - x.shape[1])))
    for l in range(_NUM_LAYERS):
        h = jnp.dot(h.astype(jnp.bfloat16), w_stack[l],
                    preferred_element_type=jnp.float32) \
            + b_stack[l].astype(jnp.float32)
        if l < _NUM_LAYERS - 1:
            h = jnp.maximum(h, 0.0)
    return h[:, :output_dim]


# ----------------------------------------------------------------------------
if __name__ == "__main__":
    # Small shapes consistent with Q_net: state dim 16, 128-wide hidden MLP,
    # 8 actions, batch of 8 states.
    batch, input_dim, output_dim = 8, 16, 8

    key = jax.random.PRNGKey(0)
    k_params, k_x = jax.random.split(key)
    params = init_qnet_params(k_params, input_dim, output_dim, hidden=128)
    x = jax.random.normal(k_x, (batch, input_dim), dtype=jnp.float32)

    # "reset_noise()" equivalent: fold noisy params once, outside the forward.
    w_train, b_train = fold_qnet_params(params, mode="Train")
    w_eval, b_eval = fold_qnet_params(params, mode="Eval")

    y_train = q_net_forward(x, w_train, b_train, output_dim)
    y_eval = q_net_forward(x, w_eval, b_eval, output_dim)
    jax.block_until_ready((y_train, y_eval))

    assert y_train.shape == (batch, output_dim)
    assert y_eval.shape == (batch, output_dim)

    # Tight check against a reference that applies the same bf16 quantization.
    ref_train_q = _q_net_ref_folded(x, w_train, b_train, output_dim)
    ref_eval_q = _q_net_ref_folded(x, w_eval, b_eval, output_dim)
    assert jnp.allclose(y_train, ref_train_q, atol=2e-3, rtol=2e-3)
    assert jnp.allclose(y_eval, ref_eval_q, atol=2e-3, rtol=2e-3)

    # Looser check against the full-f32 PyTorch-equivalent math (bf16 weight
    # quantization is the only difference).
    ref_train = _q_net_ref_f32(x, params, mode="Train")
    ref_eval = _q_net_ref_f32(x, params, mode="Eval")
    assert jnp.allclose(y_train, ref_train, atol=5e-2, rtol=5e-2)
    assert jnp.allclose(y_eval, ref_eval, atol=5e-2, rtol=5e-2)

    print("KERNEL_OK")
</pallas_src>

<mosaic_0001>
module attributes {stable_mosaic.version = 11 : i64} {
  func.func @_qnet_kernel(%arg0: memref<8x128xf32, #tpu.memory_space<vmem>>, %arg1: memref<4x128x128xbf16, #tpu.memory_space<vmem>>, %arg2: memref<4x1x128xbf16, #tpu.memory_space<vmem>>, %arg3: memref<8x128xf32, #tpu.memory_space<vmem>>) attributes {dimension_semantics = [], scalar_prefetch = 0 : i64, scratch_operands = 0 : i64, tpu.core_type = #tpu.core_type<tc>} {
    %c0 = arith.constant 0 : index
    %c0_0 = arith.constant 0 : index
    %0 = vector.load %arg0[%c0, %c0_0] : memref<8x128xf32, #tpu.memory_space<vmem>>, vector<8x128xf32>
    %c0_1 = arith.constant 0 : index
    %c0_2 = arith.constant 0 : index
    %c0_3 = arith.constant 0 : index
    %1 = vector.load %arg1[%c0_1, %c0_2, %c0_3] : memref<4x128x128xbf16, #tpu.memory_space<vmem>>, vector<1x128x128xbf16>
    %2 = vector.shape_cast %1 : vector<1x128x128xbf16> to vector<128x128xbf16>
    %c0_4 = arith.constant 0 : index
    %c0_5 = arith.constant 0 : index
    %c0_6 = arith.constant 0 : index
    %3 = vector.load %arg2[%c0_4, %c0_5, %c0_6] : memref<4x1x128xbf16, #tpu.memory_space<vmem>>, vector<1x1x128xbf16>
    %4 = vector.shape_cast %3 : vector<1x1x128xbf16> to vector<1x128xbf16>
    %5 = arith.extf %4 : vector<1x128xbf16> to vector<1x128xf32>
    %6 = arith.truncf %0 : vector<8x128xf32> to vector<8x128xbf16>
    %cst = arith.constant dense<0.000000e+00> : vector<8x128xf32>
    %7 = tpu.matmul %6, %2, %cst {dimension_numbers = #tpu.dot_dimension_numbers<[1], [0], [0], [1], [0, 0, 1, 1], [], []>} : vector<8x128xbf16>, vector<128x128xbf16>, vector<8x128xf32> -> vector<8x128xf32>
    %8 = vector.broadcast %5 : vector<1x128xf32> to vector<8x128xf32>
    %9 = arith.addf %7, %8 : vector<8x128xf32>
    %cst_7 = arith.constant 0.000000e+00 : f32
    %10 = vector.broadcast %cst_7 : f32 to vector<8x128xf32>
    %11 = arith.maximumf %9, %10 : vector<8x128xf32>
    %c1 = arith.constant 1 : index
    %c0_8 = arith.constant 0 : index
    %c0_9 = arith.constant 0 : index
    %12 = vector.load %arg1[%c1, %c0_8, %c0_9] : memref<4x128x128xbf16, #tpu.memory_space<vmem>>, vector<1x128x128xbf16>
    %13 = vector.shape_cast %12 : vector<1x128x128xbf16> to vector<128x128xbf16>
    %c1_10 = arith.constant 1 : index
    %c0_11 = arith.constant 0 : index
    %c0_12 = arith.constant 0 : index
    %14 = vector.load %arg2[%c1_10, %c0_11, %c0_12] : memref<4x1x128xbf16, #tpu.memory_space<vmem>>, vector<1x1x128xbf16>
    %15 = vector.shape_cast %14 : vector<1x1x128xbf16> to vector<1x128xbf16>
    %16 = arith.extf %15 : vector<1x128xbf16> to vector<1x128xf32>
    %17 = arith.truncf %11 : vector<8x128xf32> to vector<8x128xbf16>
    %cst_13 = arith.constant dense<0.000000e+00> : vector<8x128xf32>
    %18 = tpu.matmul %17, %13, %cst_13 {dimension_numbers = #tpu.dot_dimension_numbers<[1], [0], [0], [1], [0, 0, 1, 1], [], []>} : vector<8x128xbf16>, vector<128x128xbf16>, vector<8x128xf32> -> vector<8x128xf32>
    %19 = vector.broadcast %16 : vector<1x128xf32> to vector<8x128xf32>
    %20 = arith.addf %18, %19 : vector<8x128xf32>
    %cst_14 = arith.constant 0.000000e+00 : f32
    %21 = vector.broadcast %cst_14 : f32 to vector<8x128xf32>
    %22 = arith.maximumf %20, %21 : vector<8x128xf32>
    %c2 = arith.constant 2 : index
    %c0_15 = arith.constant 0 : index
    %c0_16 = arith.constant 0 : index
    %23 = vector.load %arg1[%c2, %c0_15, %c0_16] : memref<4x128x128xbf16, #tpu.memory_space<vmem>>, vector<1x128x128xbf16>
    %24 = vector.shape_cast %23 : vector<1x128x128xbf16> to vector<128x128xbf16>
    %c2_17 = arith.constant 2 : index
    %c0_18 = arith.constant 0 : index
    %c0_19 = arith.constant 0 : index
    %25 = vector.load %arg2[%c2_17, %c0_18, %c0_19] : memref<4x1x128xbf16, #tpu.memory_space<vmem>>, vector<1x1x128xbf16>
    %26 = vector.shape_cast %25 : vector<1x1x128xbf16> to vector<1x128xbf16>
    %27 = arith.extf %26 : vector<1x128xbf16> to vector<1x128xf32>
    %28 = arith.truncf %22 : vector<8x128xf32> to vector<8x128xbf16>
    %cst_20 = arith.constant dense<0.000000e+00> : vector<8x128xf32>
    %29 = tpu.matmul %28, %24, %cst_20 {dimension_numbers = #tpu.dot_dimension_numbers<[1], [0], [0], [1], [0, 0, 1, 1], [], []>} : vector<8x128xbf16>, vector<128x128xbf16>, vector<8x128xf32> -> vector<8x128xf32>
    %30 = vector.broadcast %27 : vector<1x128xf32> to vector<8x128xf32>
    %31 = arith.addf %29, %30 : vector<8x128xf32>
    %cst_21 = arith.constant 0.000000e+00 : f32
    %32 = vector.broadcast %cst_21 : f32 to vector<8x128xf32>
    %33 = arith.maximumf %31, %32 : vector<8x128xf32>
    %c3 = arith.constant 3 : index
    %c0_22 = arith.constant 0 : index
    %c0_23 = arith.constant 0 : index
    %34 = vector.load %arg1[%c3, %c0_22, %c0_23] : memref<4x128x128xbf16, #tpu.memory_space<vmem>>, vector<1x128x128xbf16>
    %35 = vector.shape_cast %34 : vector<1x128x128xbf16> to vector<128x128xbf16>
    %c3_24 = arith.constant 3 : index
    %c0_25 = arith.constant 0 : index
    %c0_26 = arith.constant 0 : index
    %36 = vector.load %arg2[%c3_24, %c0_25, %c0_26] : memref<4x1x128xbf16, #tpu.memory_space<vmem>>, vector<1x1x128xbf16>
    %37 = vector.shape_cast %36 : vector<1x1x128xbf16> to vector<1x128xbf16>
    %38 = arith.extf %37 : vector<1x128xbf16> to vector<1x128xf32>
    %39 = arith.truncf %33 : vector<8x128xf32> to vector<8x128xbf16>
    %cst_27 = arith.constant dense<0.000000e+00> : vector<8x128xf32>
    %40 = tpu.matmul %39, %35, %cst_27 {dimension_numbers = #tpu.dot_dimension_numbers<[1], [0], [0], [1], [0, 0, 1, 1], [], []>} : vector<8x128xbf16>, vector<128x128xbf16>, vector<8x128xf32> -> vector<8x128xf32>
    %41 = vector.broadcast %38 : vector<1x128xf32> to vector<8x128xf32>
    %42 = arith.addf %40, %41 : vector<8x128xf32>
    %c0_28 = arith.constant 0 : index
    %c0_29 = arith.constant 0 : index
    %43 = vector.load %arg3[%c0_28, %c0_29] : memref<8x128xf32, #tpu.memory_space<vmem>>, vector<8x128xf32>
    tpu.vector_store %arg3[%c0_28, %c0_29], %42 {strides = array<i32>} : memref<8x128xf32, #tpu.memory_space<vmem>>, vector<8x128xf32>,
    return
  }
}

</mosaic_0001>

<bundles_post_ra>
// kernel: q_net_forward.1
= control target key start
LH: loop header
LB: loop body
LE: loop exit
PB: predicated region body
PF: predicated region fallthrough
CT: control target
= control target key end

     0   :  { %8 = vsyncpa [#allocation3], 0  ;;  %s647_s0 = inlined_call_operand.vmem [shape: f32[8,128], index: 0, kind: input, shape index: {}]   ;;  %s648_s1 = inlined_call_operand.hbm [shape: bf16[4,128,128], index: 1, kind: input, shape index: {}]   ;;  %s649_s2 = inlined_call_operand.vmem [shape: bf16[4,1,128], index: 2, kind: input, shape index: {}]   ;;  %s650_s3 = inlined_call_operand.hbm [shape: f32[8,128], index: 3, kind: output, shape index: {}]  }
   0x1   :  { %9 = vsyncpa [#allocation4], 0  ;;  %s16_s14 = sshll.u32 %s648_s1, 4  ;;  %s602_s15 = smov [#allocation2]   ;;  %s17_s14 = int_to_ptr.hbm [resolvable:$true] %s16_s14 }
   0x2   :  { %s18_s16 = sshll.u32 %s602_s15, 4  ;;  %s603_s17 = smov 64   ;;  %s19_s16 = int_to_ptr.vmem [resolvable:$true] %s18_s16 }
   0x3   :  { %s604_s18 = smov 4  }
   0x4   :  { %24 = dma.hbm_to_vmem [thread:$0]  %s17_s14, 4096, %s19_s16, [#allocation3], %s603_s17, %s603_s17, %s604_s18  }
   0x5   :  { %598 = dma.done.wait [#allocation3], 4096  }
   0x6   :  { %599 = vsyncadd [#allocation3], 4294963200  ;;  %v521_v0 = vld [vmem:[#allocation2 + $0x38] sm:$0xff]  ;;  %v520_v1 = vld [vmem:[#allocation2 + $0x30] sm:$0xff]  ;;  %s605_s27 = smov [#allocation5]   ;;  %s373_s4 = sshll.u32 %s650_s3, 4  ;;  %s374_s4 = int_to_ptr.hbm [resolvable:$true] %s373_s4 }
   0x7   :  { %100 = vmatpush.bf16.msra.mxu0 %v521_v0  ;;  %v529_v2 = vld [vmem:[#allocation2 + $0x78] sm:$0xff]  ;;  %v528_v3 = vld [vmem:[#allocation2 + $0x70] sm:$0xff]  ;;  %v519_v4 = vld [vmem:[#allocation2 + $0x28] sm:$0xff]  ;;  %s371_s28 = sshll.u32 %s605_s27, 4  ;;  %s372_s28 = int_to_ptr.vmem [resolvable:$true] %s371_s28 }
   0x8   :  { %184 = vmatpush.bf16.msra.mxu1 %v529_v2  ;;  %v527_v5 = vld [vmem:[#allocation2 + $0x68] sm:$0xff]  ;;  %v518_v6 = vld [vmem:[#allocation2 + $0x20] sm:$0xff]  ;;  %v517_v8 = vld [vmem:[#allocation2 + $0x18] sm:$0xff] }
   0x9   :  { %v526_v7 = vld [vmem:[#allocation2 + $0x60] sm:$0xff]  ;;  %v525_v9 = vld [vmem:[#allocation2 + $0x58] sm:$0xff]  ;;  %v516_v10 = vld [vmem:[#allocation2 + $0x10] sm:$0xff] }
   0xa   :  { %v524_v11 = vld [vmem:[#allocation2 + $0x50] sm:$0xff]  ;;  %v515_v12 = vld [vmem:[#allocation2 + $0x8] sm:$0xff]  ;;  %v514_v13 = vld [vmem:[#allocation2] sm:$0xff] }
   0xb   :  { %101 = vmatpush.bf16.msra.mxu0 %v520_v1  ;;  %v31_v14 = vld [vmem:[%s647_s0] sm:$0xff]  ;;  %v523_v16 = vld [vmem:[#allocation2 + $0x48] sm:$0xff]  ;;  %v537_v18 = vld [vmem:[#allocation2 + $0xb8] sm:$0xff] }
   0xc   :  { %185 = vmatpush.bf16.msra.mxu1 %v528_v3  ;;  %v50_v15 = vpack.c.bf16 %v31_v14, %v31_v14  ;;  %v522_v17 = vld [vmem:[#allocation2 + $0x40] sm:$0xff]  ;;  %268 = vmatpush.bf16.msra.mxu2 %v537_v18  ;;  %v536_v19 = vld [vmem:[#allocation2 + $0xb0] sm:$0xff]  ;;  %v535_v20 = vld [vmem:[#allocation2 + $0xa8] sm:$0xff] }
   0xd   :  { %v534_v21 = vld [vmem:[#allocation2 + $0xa0] sm:$0xff]  ;;  %v533_v23 = vld [vmem:[#allocation2 + $0x98] sm:$0xff]  ;;  %v532_v25 = vld [vmem:[#allocation2 + $0x90] sm:$0xff] }
   0xe   :  { %v48_v22 = vld [vmem:[%s649_s2] sm:$0x1]  ;;  %v531_v32 = vld [vmem:[#allocation2 + $0x88] sm:$0xff]  ;;  %v545_v34 = vld [vmem:[#allocation2 + $0xf8] sm:$0xff] }
   0xf   :  { %102 = vmatpush.bf16.msra.mxu0 %v519_v4  ;;  %v49_v24 = vunpack.c.l.bf16 %v48_v22  ;;  %v530_v33 = vld [vmem:[#allocation2 + $0x80] sm:$0xff]  ;;  %352 = vmatpush.bf16.msra.mxu3 %v545_v34  ;;  %v544_v35 = vld [vmem:[#allocation2 + $0xf0] sm:$0xff]  ;;  %v543_v36 = vld [vmem:[#allocation2 + $0xe8] sm:$0xff] }
  0x10   :  { %186 = vmatpush.bf16.msra.mxu1 %v527_v5  ;;  %269 = vmatpush.bf16.msra.mxu2 %v536_v19  ;;  %v542_v37 = vld [vmem:[#allocation2 + $0xe0] sm:$0xff]  ;;  %v541_v39 = vld [vmem:[#allocation2 + $0xd8] sm:$0xff]  ;;  %v540_v41 = vld [vmem:[#allocation2 + $0xd0] sm:$0xff] }
  0x11   :  { %v51_v26 = vperm.slane %v49_v24, 0  ;;  %v415_v38 = vld [vmem:[%s649_s2 + $0x1] sm:$0x1]  ;;  %v539_v48 = vld [vmem:[#allocation2 + $0xc8] sm:$0xff]  ;;  %v448_v50 = vld [vmem:[%s649_s2 + $0x2] sm:$0x1] }
  0x12   :  { %v133_v40 = vunpack.c.l.bf16 %v415_v38  ;;  %v538_v49 = vld [vmem:[#allocation2 + $0xc0] sm:$0xff]  ;;  %v217_v51 = vunpack.c.l.bf16 %v448_v50 }
  0x13   :  { %103 = vmatpush.bf16.msra.mxu0 %v518_v6  ;;  %353 = vmatpush.bf16.msra.mxu3 %v544_v35  ;;  %v481_v58 = vld [vmem:[%s649_s2 + $0x3] sm:$0x1] }
  0x14   :  { %187 = vmatpush.bf16.msra.mxu1 %v526_v7  ;;  %270 = vmatpush.bf16.msra.mxu2 %v535_v20  ;;  %v135_v42 = vperm.slane %v133_v40, 0  ;;  %v219_v52 = vperm.slane %v217_v51, 0  ;;  %v301_v59 = vunpack.c.l.bf16 %v481_v58 }
  0x16   :  { %v303_v60 = vperm.slane %v301_v59, 0 }
  0x17   :  { %104 = vmatpush.bf16.msra.mxu0 %v517_v8  ;;  %354 = vmatpush.bf16.msra.mxu3 %v543_v36 }
  0x18   :  { %188 = vmatpush.bf16.msra.mxu1 %v525_v9  ;;  %271 = vmatpush.bf16.msra.mxu2 %v534_v21 }
  0x1b   :  { %105 = vmatpush.bf16.msra.mxu0 %v516_v10  ;;  %355 = vmatpush.bf16.msra.mxu3 %v542_v37 }
  0x1c   :  { %189 = vmatpush.bf16.msra.mxu1 %v524_v11  ;;  %272 = vmatpush.bf16.msra.mxu2 %v533_v23 }
  0x1f   :  { %106 = vmatpush.bf16.msra.mxu0 %v515_v12  ;;  %356 = vmatpush.bf16.msra.mxu3 %v541_v39 }
  0x20   :  { %190 = vmatpush.bf16.msra.mxu1 %v523_v16  ;;  %273 = vmatpush.bf16.msra.mxu2 %v532_v25 }
  0x23   :  { %107 = vmatpush.bf16.msra.mxu0 %v514_v13  ;;  %357 = vmatpush.bf16.msra.mxu3 %v540_v41 }
  0x24   :  { %191 = vmatpush.bf16.msra.mxu1 %v522_v17  ;;  %274 = vmatpush.bf16.msra.mxu2 %v531_v32 }
  0x26   :  { %108 = vmatmul.bf16.vlgmr.msra.gmra.mxu0 %v50_v15 }
  0x27   :  { %358 = vmatpush.bf16.msra.mxu3 %v539_v48 }
  0x28   :  { %275 = vmatpush.bf16.msra.mxu2 %v530_v33 }
  0x2b   :  { %359 = vmatpush.bf16.msra.mxu3 %v538_v49 }
  0xa3   :  { %v109_v27 = vpop.f32.mrf.mxu0 }
  0xa4   :  { %v110_v28 = vadd.f32 %v109_v27, %v51_v26 }
  0xa6   :  { %v113_v29 = vmax.f32 %v110_v28, 0.0 }
  0xa8   :  { %v134_v30 = vpack.c.bf16 %v113_v29, %v113_v29 }
  0xaa   :  { %192 = vmatmul.bf16.vlgmr.msra.gmra.mxu1 %v134_v30 }
  0xab   :  { %v111_v31 = vpop.f32.mrf.mxu0 }
 0x127   :  { %v193_v43 = vpop.f32.mrf.mxu1 }
 0x128   :  { %v194_v44 = vadd.f32 %v193_v43, %v135_v42 }
 0x12a   :  { %v197_v45 = vmax.f32 %v194_v44, 0.0 }
 0x12c   :  { %v218_v46 = vpack.c.bf16 %v197_v45, %v197_v45 }
 0x12e   :  { %276 = vmatmul.bf16.vlgmr.msra.gmra.mxu2 %v218_v46 }
 0x12f   :  { %v195_v47 = vpop.f32.mrf.mxu1 }
 0x1b1   :  { %v277_v53 = vpop.f32.mrf.mxu2 }
 0x1b2   :  { %v278_v54 = vadd.f32 %v277_v53, %v219_v52 }
 0x1b4   :  { %v281_v55 = vmax.f32 %v278_v54, 0.0 }
 0x1b6   :  { %v302_v56 = vpack.c.bf16 %v281_v55, %v281_v55 }
 0x1b8   :  { %360 = vmatmul.bf16.vlgmr.msra.gmra.mxu3 %v302_v56 }
 0x1b9   :  { %v279_v57 = vpop.f32.mrf.mxu2 }
 0x23b   :  { %v361_v61 = vpop.f32.mrf.mxu3 }
 0x23c   :  { %v362_v62 = vadd.f32 %v361_v61, %v303_v60 }
 0x23e   :  { %365 = vst [vmem:[#allocation5] sm:$0xff] %v362_v62 }
 0x23f   :  { %376 = dma.vmem_to_hbm [thread:$0]  %s372_s28, 128, %s374_s4, [#allocation4]  }
 0x243   :  { %v363_v63 = vpop.f32.mrf.mxu3 }
 0x244   :  { %600 = dma.done.wait [#allocation4], 128  }
 0x245   :  { %601 = vsyncadd [#allocation4], 4294967168 }
 0x246   :  { %381 = vsyncpa [#allocation3], 1 }
 0x247   :  { %382 = vsyncpa [#allocation4], 1 }

</bundles_post_ra>
